<compile_context>
chip_gen: v6e
topology: v6e:2x2x1
jax: 0.10.0
libtpu: 0.0.40
codegen_flags: <defaults>
</compile_context>

<pallas_src>
import functools

import jax
import jax.numpy as jnp
from jax import lax
from jax.experimental import pallas as pl
from jax.experimental.pallas import tpu as pltpu

TEMP = 0.07
INV_TEMP = 1.0 / TEMP
EPS = 1e-12          # torch F.normalize clamps the norm at 1e-12
NEG_INF = -1e30      # mask value for padded columns


def _row_scale(x, extra_scale=1.0):
    """1 / max(||x||_2, EPS) per row (times extra_scale), as a (rows, 1) factor."""
    ss = jnp.sum(x * x, axis=1, keepdims=True)
    return lax.rsqrt(jnp.maximum(ss, EPS * EPS)) * extra_scale


def _infonce_kernel(za_ref, zbf_ref, zbd_ref, loss_ref, corr_ref,
                    *, n_valid, n_pad, tq):
    # za_ref:  (tq, Dp)   row tile of Z_a
    # zbf_ref: (Npad, Dp) full Z_b (resident across grid steps)
    # zbd_ref: (tq, Dp)   matching row tile of Z_b (positive pairs / diagonal)
    za = za_ref[...].astype(jnp.float32)
    zb_full = zbf_ref[...].astype(jnp.float32)
    zb_diag = zbd_ref[...].astype(jnp.float32)

    # Row-wise L2 normalize; fold 1/TEMP into the Z_a scaling so the (tq, Npad)
    # logits tile never sees a separate divide/multiply.
    za_s = za * _row_scale(za, INV_TEMP)                  # (tq, Dp)
    zb_n = zb_full * _row_scale(zb_full)                  # (Npad, Dp)
    zbd_n = zb_diag * _row_scale(zb_diag)                 # (tq, Dp)

    # logits[q, k] = <za_s[q], zb_n[k]> (already temperature-scaled), on the
    # MXU, contracting dim 1 of both operands (no explicit transpose).
    logits = lax.dot_general(
        za_s, zb_n,
        dimension_numbers=(((1,), (1,)), ((), ())),
        preferred_element_type=jnp.float32)               # (tq, Npad)

    col_ids = lax.broadcasted_iota(jnp.int32, (tq, n_pad), 1)
    if n_pad > n_valid:  # static: mask padded columns out of the LSE / argmax
        logits = jnp.where(col_ids < n_valid, logits, NEG_INF)

    # Positive-pair (diagonal) logit computed directly: O(tq * D), no N^2 mask.
    diag = jnp.sum(za_s * zbd_n, axis=1, keepdims=True)   # (tq, 1)

    # Numerically stable per-row cross entropy: lse_i - logits[i, i].
    row_max = jnp.max(logits, axis=1, keepdims=True)      # (tq, 1)
    lse = jnp.log(jnp.sum(jnp.exp(logits - row_max), axis=1, keepdims=True)) + row_max
    loss_ref[...] = lse - diag

    # argmax(softmax(logits)) == argmax(logits); keep first-max tie-break.
    is_max = logits >= row_max
    pred = jnp.min(jnp.where(is_max, col_ids, n_pad), axis=1, keepdims=True)
    labels = pl.program_id(0) * tq + lax.broadcasted_iota(jnp.int32, (tq, 1), 0)
    corr_ref[...] = (pred == labels).astype(jnp.float32)


def _round_up(x, m):
    return (x + m - 1) // m * m


def infonce(z_a, z_b, *, tq=256):
    assert z_a.shape == z_b.shape and z_a.ndim == 2
    N, D = z_a.shape

    # Lane-dense feature dim (multiple of 128); sublane-aligned row tiles.
    d_pad = _round_up(D, 128)
    if N <= tq:
        tq = _round_up(N, 8)
    n_pad = _round_up(N, tq)
    grid = (n_pad // tq,)

    if (n_pad, d_pad) != (N, D):
        z_a = jnp.pad(z_a, ((0, n_pad - N), (0, d_pad - D)))
        z_b = jnp.pad(z_b, ((0, n_pad - N), (0, d_pad - D)))

    kernel = functools.partial(_infonce_kernel, n_valid=N, n_pad=n_pad, tq=tq)

    # Rough VMEM budget: double-buffered row tiles + resident Z_b + logits
    # temporaries.  Clamp to [32 MiB default scope, 64 MiB v7x physical].
    vmem_bytes = 4 * (2 * 2 * tq * d_pad + n_pad * d_pad + 3 * tq * n_pad) + (1 << 20)
    vmem_limit = int(min(max(vmem_bytes, 32 * 1024 * 1024), 64 * 1024 * 1024))

    loss_rows, corr_rows = pl.pallas_call(
        kernel,
        grid=grid,
        in_specs=[
            pl.BlockSpec((tq, d_pad), lambda i: (i, 0)),      # Z_a row tile
            pl.BlockSpec((n_pad, d_pad), lambda i: (0, 0)),   # Z_b, resident
            pl.BlockSpec((tq, d_pad), lambda i: (i, 0)),      # Z_b row tile (diag)
        ],
        out_specs=(
            pl.BlockSpec((tq, 1), lambda i: (i, 0)),
            pl.BlockSpec((tq, 1), lambda i: (i, 0)),
        ),
        out_shape=(
            jax.ShapeDtypeStruct((n_pad, 1), jnp.float32),
            jax.ShapeDtypeStruct((n_pad, 1), jnp.float32),
        ),
        compiler_params=pltpu.CompilerParams(
            dimension_semantics=("parallel",),   # row tiles shard across TCs on v7x
            vmem_limit_bytes=vmem_limit,
        ),
    )(z_a, z_b, z_b)

    # Final mean over the N valid rows (tiny XLA reduction in the wrapper).
    loss = jnp.sum(loss_rows[:N, 0]) / N
    acc = jnp.sum(corr_rows[:N, 0]) / N
    return loss, acc


def _reference(z_a, z_b):
    """Pure-JAX reference mirroring the PyTorch forward."""
    za_n = z_a / jnp.maximum(jnp.linalg.norm(z_a, axis=1, keepdims=True), EPS)
    zb_n = z_b / jnp.maximum(jnp.linalg.norm(z_b, axis=1, keepdims=True), EPS)
    dot = (za_n @ zb_n.T) / TEMP
    labels = jnp.arange(z_a.shape[0])
    logp = jax.nn.log_softmax(dot, axis=1)
    loss = -jnp.mean(logp[jnp.arange(z_a.shape[0]), labels])
    acc = jnp.mean((jnp.argmax(dot, axis=1) == labels).astype(jnp.float32))
    return loss, acc


if __name__ == "__main__":
    # Small deterministic inputs: N=8 samples, D=32 features per branch.
    key = jax.random.PRNGKey(0)
    ka, kb = jax.random.split(key)
    N, D = 8, 32
    z_a = jax.random.normal(ka, (N, D), dtype=jnp.float32)
    z_b = jax.random.normal(kb, (N, D), dtype=jnp.float32)

    loss, acc = infonce(z_a, z_b)
    jax.block_until_ready((loss, acc))

    # Sanity check against pure-JAX reference.
    ref_loss, ref_acc = _reference(z_a, z_b)
    assert jnp.allclose(loss, ref_loss, atol=1e-4, rtol=1e-4), (loss, ref_loss)
    assert jnp.allclose(acc, ref_acc, atol=1e-6), (acc, ref_acc)

    print("KERNEL_OK")
</pallas_src>

<mosaic_0001>
module attributes {stable_mosaic.version = 11 : i64} {
  func.func @_infonce_kernel(%arg0: i32, %arg1: memref<8x128xf32, #tpu.memory_space<vmem>>, %arg2: memref<8x128xf32, #tpu.memory_space<vmem>>, %arg3: memref<8x128xf32, #tpu.memory_space<vmem>>, %arg4: memref<8x1xf32, #tpu.memory_space<vmem>>, %arg5: memref<8x1xf32, #tpu.memory_space<vmem>>) attributes {dimension_semantics = [#tpu.dimension_semantics<parallel>], iteration_bounds = array<i64: 1>, scalar_prefetch = 0 : i64, scratch_operands = 0 : i64, tpu.core_type = #tpu.core_type<tc>, window_params = [{transform_indices = @transform_0, window_bounds = array<i64: 8, 128>}, {pipeline_mode = #tpu.pipeline_mode<synchronous>, transform_indices = @transform_1, window_bounds = array<i64: 8, 128>}, {transform_indices = @transform_2, window_bounds = array<i64: 8, 128>}, {transform_indices = @transform_3, window_bounds = array<i64: 8, 1>}, {transform_indices = @transform_4, window_bounds = array<i64: 8, 1>}]} {
    %c0 = arith.constant 0 : index
    %c0_0 = arith.constant 0 : index
    %0 = vector.load %arg1[%c0, %c0_0] : memref<8x128xf32, #tpu.memory_space<vmem>>, vector<8x128xf32>
    %c0_1 = arith.constant 0 : index
    %c0_2 = arith.constant 0 : index
    %1 = vector.load %arg2[%c0_1, %c0_2] : memref<8x128xf32, #tpu.memory_space<vmem>>, vector<8x128xf32>
    %c0_3 = arith.constant 0 : index
    %c0_4 = arith.constant 0 : index
    %2 = vector.load %arg3[%c0_3, %c0_4] : memref<8x128xf32, #tpu.memory_space<vmem>>, vector<8x128xf32>
    %3 = arith.mulf %0, %0 : vector<8x128xf32>
    %cst = arith.constant dense<0.000000e+00> : vector<8xf32>
    %4 = vector.multi_reduction <add>, %3, %cst [1] : vector<8x128xf32> to vector<8xf32>
    %5 = vector.shape_cast %4 : vector<8xf32> to vector<8x1xf32>
    %cst_5 = arith.constant 1.000000e-24 : f32
    %6 = vector.broadcast %cst_5 : f32 to vector<8x1xf32>
    %7 = arith.maximumf %5, %6 : vector<8x1xf32>
    %8 = math.rsqrt %7 : vector<8x1xf32>
    %cst_6 = arith.constant 14.2857141 : f32
    %9 = vector.broadcast %cst_6 : f32 to vector<8x1xf32>
    %10 = arith.mulf %8, %9 : vector<8x1xf32>
    %11 = vector.broadcast %10 : vector<8x1xf32> to vector<8x128xf32>
    %12 = arith.mulf %0, %11 : vector<8x128xf32>
    %13 = arith.mulf %1, %1 : vector<8x128xf32>
    %cst_7 = arith.constant dense<0.000000e+00> : vector<8xf32>
    %14 = vector.multi_reduction <add>, %13, %cst_7 [1] : vector<8x128xf32> to vector<8xf32>
    %15 = vector.shape_cast %14 : vector<8xf32> to vector<8x1xf32>
    %cst_8 = arith.constant 1.000000e-24 : f32
    %16 = vector.broadcast %cst_8 : f32 to vector<8x1xf32>
    %17 = arith.maximumf %15, %16 : vector<8x1xf32>
    %18 = math.rsqrt %17 : vector<8x1xf32>
    %cst_9 = arith.constant 1.000000e+00 : f32
    %19 = vector.broadcast %cst_9 : f32 to vector<8x1xf32>
    %20 = arith.mulf %18, %19 : vector<8x1xf32>
    %21 = vector.broadcast %20 : vector<8x1xf32> to vector<8x128xf32>
    %22 = arith.mulf %1, %21 : vector<8x128xf32>
    %23 = arith.mulf %2, %2 : vector<8x128xf32>
    %cst_10 = arith.constant dense<0.000000e+00> : vector<8xf32>
    %24 = vector.multi_reduction <add>, %23, %cst_10 [1] : vector<8x128xf32> to vector<8xf32>
    %25 = vector.shape_cast %24 : vector<8xf32> to vector<8x1xf32>
    %cst_11 = arith.constant 1.000000e-24 : f32
    %26 = vector.broadcast %cst_11 : f32 to vector<8x1xf32>
    %27 = arith.maximumf %25, %26 : vector<8x1xf32>
    %28 = math.rsqrt %27 : vector<8x1xf32>
    %cst_12 = arith.constant 1.000000e+00 : f32
    %29 = vector.broadcast %cst_12 : f32 to vector<8x1xf32>
    %30 = arith.mulf %28, %29 : vector<8x1xf32>
    %31 = vector.broadcast %30 : vector<8x1xf32> to vector<8x128xf32>
    %32 = arith.mulf %2, %31 : vector<8x128xf32>
    %cst_13 = arith.constant dense<0.000000e+00> : vector<8x8xf32>
    %33 = tpu.matmul %12, %22, %cst_13 {dimension_numbers = #tpu.dot_dimension_numbers<[1], [1], [0], [0], [0, 0, 1, 0], [], []>} : vector<8x128xf32>, vector<8x128xf32>, vector<8x8xf32> -> vector<8x8xf32>
    %34 = tpu.iota {dimensions = array<i32: 1>} : vector<8x8xi32>
    %35 = arith.mulf %12, %32 : vector<8x128xf32>
    %cst_14 = arith.constant dense<0.000000e+00> : vector<8xf32>
    %36 = vector.multi_reduction <add>, %35, %cst_14 [1] : vector<8x128xf32> to vector<8xf32>
    %37 = vector.shape_cast %36 : vector<8xf32> to vector<8x1xf32>
    %cst_15 = arith.constant dense<0xFF800000> : vector<8xf32>
    %38 = vector.multi_reduction <maximumf>, %33, %cst_15 [1] : vector<8x8xf32> to vector<8xf32>
    %39 = vector.shape_cast %38 : vector<8xf32> to vector<8x1xf32>
    %40 = vector.broadcast %39 : vector<8x1xf32> to vector<8x8xf32>
    %41 = arith.subf %33, %40 : vector<8x8xf32>
    %42 = math.exp %41 : vector<8x8xf32>
    %cst_16 = arith.constant dense<0.000000e+00> : vector<8xf32>
    %43 = vector.multi_reduction <add>, %42, %cst_16 [1] : vector<8x8xf32> to vector<8xf32>
    %44 = vector.shape_cast %43 : vector<8xf32> to vector<8x1xf32>
    %45 = math.log %44 : vector<8x1xf32>
    %46 = arith.addf %45, %39 : vector<8x1xf32>
    %47 = arith.subf %46, %37 : vector<8x1xf32>
    %c0_17 = arith.constant 0 : index
    %c0_18 = arith.constant 0 : index
    %48 = vector.load %arg4[%c0_17, %c0_18] : memref<8x1xf32, #tpu.memory_space<vmem>>, vector<8x1xf32>
    tpu.vector_store %arg4[%c0_17, %c0_18], %47 {strides = array<i32>} : memref<8x1xf32, #tpu.memory_space<vmem>>, vector<8x1xf32>,
    %49 = vector.broadcast %39 : vector<8x1xf32> to vector<8x8xf32>
    %50 = arith.cmpf oge, %33, %49 : vector<8x8xf32>
    %c8_i32 = arith.constant 8 : i32
    %51 = vector.broadcast %c8_i32 : i32 to vector<8x8xi32>
    %52 = arith.select %50, %34, %51 : vector<8x8xi1>, vector<8x8xi32>
    %cst_19 = arith.constant dense<2147483647> : vector<8xi32>
    %53 = vector.multi_reduction <minsi>, %52, %cst_19 [1] : vector<8x8xi32> to vector<8xi32>
    %54 = vector.shape_cast %53 : vector<8xi32> to vector<8x1xi32>
    %c8_i32_20 = arith.constant 8 : i32
    %55 = arith.muli %arg0, %c8_i32_20 : i32
    %56 = tpu.iota {dimensions = array<i32: 0>} : vector<8x1xi32>
    %57 = vector.broadcast %55 : i32 to vector<8x1xi32>
    %58 = arith.addi %57, %56 : vector<8x1xi32>
    %59 = arith.cmpi eq, %54, %58 : vector<8x1xi32>
    %60 = arith.extui %59 : vector<8x1xi1> to vector<8x1xi32>
    %61 = arith.sitofp %60 : vector<8x1xi32> to vector<8x1xf32>
    %c0_21 = arith.constant 0 : index
    %c0_22 = arith.constant 0 : index
    %62 = vector.load %arg5[%c0_21, %c0_22] : memref<8x1xf32, #tpu.memory_space<vmem>>, vector<8x1xf32>
    tpu.vector_store %arg5[%c0_21, %c0_22], %61 {strides = array<i32>} : memref<8x1xf32, #tpu.memory_space<vmem>>, vector<8x1xf32>,
    return
  }
  func.func @transform_0(%arg0: i32) -> (i32, i32) {
    %c0_i32 = arith.constant 0 : i32
    %c0_i32_0 = arith.constant 0 : i32
    return %arg0, %c0_i32 : i32, i32
  }
  func.func @transform_1(%arg0: i32) -> (i32, i32) {
    %c0_i32 = arith.constant 0 : i32
    %c0_i32_0 = arith.constant 0 : i32
    %c0_i32_1 = arith.constant 0 : i32
    return %c0_i32, %c0_i32_0 : i32, i32
  }
  func.func @transform_2(%arg0: i32) -> (i32, i32) {
    %c0_i32 = arith.constant 0 : i32
    %c0_i32_0 = arith.constant 0 : i32
    return %arg0, %c0_i32 : i32, i32
  }
  func.func @transform_3(%arg0: i32) -> (i32, i32) {
    %c0_i32 = arith.constant 0 : i32
    %c0_i32_0 = arith.constant 0 : i32
    return %arg0, %c0_i32 : i32, i32
  }
  func.func @transform_4(%arg0: i32) -> (i32, i32) {
    %c0_i32 = arith.constant 0 : i32
    %c0_i32_0 = arith.constant 0 : i32
    return %arg0, %c0_i32 : i32, i32
  }
}

</mosaic_0001>

<bundles_post_ra>
// kernel: tpu_custom_call.1
= control target key start
LH: loop header
LB: loop body
LE: loop exit
PB: predicated region body
PF: predicated region fallthrough
CT: control target
= control target key end

     0   :  { %10 = vsyncpa [#allocation3], 0  ;;  %s338_s0 = inlined_call_operand.hbm [shape: f32[8,128], index: 0, kind: input, shape index: {}]   ;;  %s339_s1 = inlined_call_operand.hbm [shape: f32[8,128], index: 1, kind: input, shape index: {}]   ;;  %s340_s2 = inlined_call_operand.hbm [shape: f32[8,128], index: 2, kind: input, shape index: {}]   ;;  %s341_s3 = inlined_call_operand.vmem [shape: f32[8,1], index: 3, kind: output, shape index: {0}]   ;;  %s342_s4 = inlined_call_operand.vmem [shape: f32[8,1], index: 4, kind: output, shape index: {1}]  }
   0x1   :  { %11 = vsyncpa [#allocation5], 0  ;;  %s287_s15 = smov [#allocation4]   ;;  %s288_s17 = smov [#allocation2]  }
   0x2   :  { %s28_s16 = sshll.u32 %s287_s15, 4  ;;  %s18_s18 = sshll.u32 %s288_s17, 4  ;;  %s29_s16 = int_to_ptr.vmem [resolvable:$true] %s28_s16  ;;  %s19_s18 = int_to_ptr.vmem [resolvable:$true] %s18_s18 }
   0x3   :  { %s231_s19 = scalar_lea.vmem %s29_s16, 128  ;;  %p236_p1 = scmp.lt.s32.totalorder %s29_s16, %s29_s16 }
   0x4   :  { %p232_p0 = scmp.ne.s32.totalorder %s29_s16, %s231_s19  ;;  %p237_p2 = scmp.lt.s32.totalorder %s231_s19, %s231_s19 }
   0x6   :  { %p238_p3 = por %p237_p2, %p236_p1 }
   0x8   :  { %p239_p4 = pnand %p238_p3, %p232_p0 }
   0xa   :  { %242 = shalt.err (!%p239_p4)
}
   0xb   :  { %31 = dma.hbm_to_vmem [thread:$0]  %s339_s1, 128, %s29_s16, [#allocation5]  }
   0xc   :  { %s251_s22 = scalar_lea.vmem %s19_s18, 128  ;;  %p256_p6 = scmp.lt.s32.totalorder %s19_s18, %s19_s18 }
   0xd   :  { %p252_p5 = scmp.ne.s32.totalorder %s19_s18, %s251_s22  ;;  %p257_p7 = scmp.lt.s32.totalorder %s251_s22, %s251_s22 }
   0xf   :  { %p258_p8 = por %p257_p7, %p256_p6 }
  0x11   :  { %p259_p9 = pnand %p258_p8, %p252_p5 }
  0x13   :  { %262 = shalt.err (!%p259_p9)
}
  0x14   :  { %21 = dma.hbm_to_vmem [thread:$0]  %s338_s0, 128, %s19_s18, [#allocation3]  }
  0x15   :  { %s289_s25 = smov [#allocation6]  }
  0x16   :  { %s38_s26 = sshll.u32 %s289_s25, 4  ;;  %s39_s26 = int_to_ptr.vmem [resolvable:$true] %s38_s26 }
  0x17   :  { %s271_s27 = scalar_lea.vmem %s39_s26, 128  ;;  %p276_p11 = scmp.lt.s32.totalorder %s39_s26, %s39_s26 }
  0x18   :  { %p272_p10 = scmp.ne.s32.totalorder %s39_s26, %s271_s27  ;;  %p277_p12 = scmp.lt.s32.totalorder %s271_s27, %s271_s27 }
  0x1a   :  { %p278_p13 = por %p277_p12, %p276_p11 }
  0x1c   :  { %p279_p0 = pnand %p278_p13, %p272_p10 }
  0x1e   :  { %282 = shalt.err (!%p279_p0)
}
  0x1f   :  { %41 = dma.hbm_to_vmem [thread:$0]  %s340_s2, 128, %s39_s26, [#allocation5]  }
  0x20   :  { %283 = dma.done.wait [#allocation3], 128  }
  0x21   :  { %284 = vsyncadd [#allocation3], 4294967168 }
  0x22   :  { %285 = dma.done.wait [#allocation5], 256  }
  0x23   :  { %286 = vsyncadd [#allocation5], 4294967040  ;;  %v52_v0 = vld [vmem:[#allocation4] sm:$0xff]  ;;  %v51_v1 = vld [vmem:[#allocation2] sm:$0xff]  ;;  %v290_v4 = vmov 0.0   ;;  %vm291_vm0 = vmmov 0   ;;  %v143_v19 = vlaneseq }
  0x24   :  { %v61_v2 = vmul.f32 %v52_v0, %v52_v0  ;;  %v54_v3 = vmul.f32 %v51_v1, %v51_v1  ;;  %203 = vmatprep.subr.mxu0 %v290_v4  ;;  %205 = vmatprep.mubr.msk.f32.mxu0 %vm291_vm0, %v290_v4  ;;  %vm148_vm1 = vcmask 64512   ;;  %v53_v14 = vld [vmem:[#allocation6] sm:$0xff]  ;;  %vm162_vm4 = vcmask 7168  }
  0x25   :  { %v67_v18 = vmul.f32 %v53_v14, %v53_v14  ;;  %v144_v20 = vand.u32 127, %v143_v19  ;;  %v183_v48 = vshrl.u32 %v143_v19, 7 }
  0x26   :  { %62 = vadd.xlane.f32.xlu0 %v61_v2 }
  0x2a   :  { %55 = vadd.xlane.f32.xlu0 %v54_v3 }
  0xaf   :  { %v63_v5 = vpop.xlane.xlu0 %62 }
  0xb0   :  { %v64_v6 = vmax.f32 %v63_v5, 1e-24 }
  0xb2   :  { %213 = vrsqrt.f32 %v64_v6 }
  0xb3   :  { %v56_v7 = vpop.xlane.xlu0 %55 }
  0xb4   :  { %v57_v8 = vmax.f32 %v56_v7, 1e-24 }
  0xb6   :  { %215 = vrsqrt.f32 %v57_v8 }
  0xbf   :  { %v214_v9 = vpop.eup %213 }
  0xc0   :  { %v66_v10 = vmul.f32 %v214_v9, %v52_v0 }
  0xc2   :  { %204 = vmatpush3.xpose.msra.mxu0 %v66_v10 }
  0xc3   :  { %v216_v11 = vpop.eup %215 }
  0xc4   :  { %v59_v12 = vmul.f32 14.285714, %v216_v11 }
  0xc6   :  { %v60_v13 = vmul.f32 %v59_v12, %v51_v1 }
  0xc8   :  { %206 = vmatmul.mubr.f32.vlgmr.msra.gmra.mxu0 %v60_v13 }
 0x188   :  { %v139_v15 = vpop.f32.mrf.mxu0 }
 0x189   :  { %v149_v16 = vsel %vm148_vm1, %v139_v15, -inf }
 0x18a   :  { %150 = vmax.xlane.f32.xlu1 %v149_v16  ;;  %v207_v17 = vpop.f32.mrf.mxu0 }
 0x18e   :  { %68 = vadd.xlane.f32.xlu1 %v67_v18 }
 0x213   :  { %v151_v21 = vpop.xlane.xlu1 %150 }
 0x214   :  { %v152_v22 = vsub.f32 %v139_v15, %v151_v21  ;;  %vm164_vm2 = vcmp.ge.f32.partialorder %v139_v15, %v151_v21 }
 0x215   :  { %v165_v23 = vsel %vm164_vm2, %v144_v20, 8 }
 0x216   :  { %v153_v24 = vmul.f32 1.442695, %v152_v22  ;;  %v166_v25 = vsel %vm148_vm1, %v165_v23, 2147483647 }
 0x217   :  { %v69_v26 = vpop.xlane.xlu1 %68  ;;  %v168_v27 = vshra.s32 %v166_v25, 16  ;;  %v167_v35 = vand.u32 65535, %v166_v25 }
 0x218   :  { %217 = vpow2.f32 %v153_v24  ;;  %v70_v28 = vmax.f32 %v69_v26, 1e-24 }
 0x219   :  { %v170_v29 = vcvt.s32.f32 %v168_v27  ;;  %v169_v37 = vcvt.s32.f32 %v167_v35 }
 0x21a   :  { %219 = vrsqrt.f32 %v70_v28 }
 0x21b   :  { %171 = vmin.xlane.f32.xlu0 %v170_v29 }
 0x225   :  { %v218_v30 = vpop.eup %217 }
 0x226   :  { %v155_v31 = vsel %vm148_vm1, %v218_v30, 0.0 }
 0x227   :  { %v220_v32 = vpop.eup %219  ;;  %156 = vadd.xlane.f32.xlu1 %v155_v31 }
 0x228   :  { %v72_v33 = vmul.f32 %v220_v32, %v53_v14 }
 0x22a   :  { %v145_v34 = vmul.f32 %v72_v33, %v60_v13 }
 0x22c   :  { %146 = vadd.xlane.f32.xlu1 %v145_v34 }
 0x2a4   :  { %v172_v36 = vpop.xlane.xlu0 %171 }
 0x2a5   :  { %vm173_vm3 = vcmp.eq.f32.partialorder %v170_v29, %v172_v36  ;;  %v178_v45 = vcvt.f32.s32 %v172_v36 }
 0x2a6   :  { %v174_v38 = vsel %vm173_vm3, %v169_v37, inf }
 0x2a7   :  { %175 = vmin.xlane.f32.xlu0 %v174_v38  ;;  %v179_v47 = vshll.u32 %v178_v45, 16 }
 0x2b0   :  { %v157_v39 = vpop.xlane.xlu1 %156 }
 0x2b1   :  { %221 = vlog2.f32 %v157_v39 }
 0x2b5   :  { %v147_v43 = vpop.xlane.xlu1 %146 }
 0x2be   :  { %v222_v40 = vpop.eup %221 }
 0x2bf   :  { %v159_v41 = vmul.f32 0.6931472, %v222_v40 }
 0x2c1   :  { %v160_v42 = vadd.f32 %v159_v41, %v151_v21 }
 0x2c3   :  { %v161_v44 = vsub.f32 %v160_v42, %v147_v43 }
 0x2c5   :  { %163 = vst.msk [vmem:[%s341_s3] sm:$0xff] %vm162_vm4, %v161_v44 }
 0x330   :  { %v176_v46 = vpop.xlane.xlu0 %175 }
 0x331   :  { %v177_v49 = vcvt.f32.s32 %v176_v46 }
 0x333   :  { %v180_v50 = vadd.s32 %v179_v47, %v177_v49 }
 0x335   :  { %vm186_vm5 = vcmp.eq.s32.totalorder %v180_v50, %v183_v48 }
 0x336   :  { %v200_v51 = vsel %vm186_vm5, 1.0, %v290_v4 }
 0x337   :  { %189 = vst.msk [vmem:[%s342_s4] sm:$0xff] %vm162_vm4, %v200_v51 }
 0x338   :  { %198 = vsyncpa [#allocation3], 1 }
 0x339   :  { %199 = vsyncpa [#allocation5], 1 }

</bundles_post_ra>
